<compile_context>
chip_gen: v7x
topology: tpu7x:2x2x1
jax: 0.10.0
libtpu: 0.0.40
codegen_flags: <defaults>
</compile_context>

<pallas_src>
import functools

import jax
import jax.numpy as jnp
from jax import lax
from jax.experimental import pallas as pl
from jax.experimental.pallas import tpu as pltpu


_ACT_DTYPE = jnp.bfloat16            # storage dtype for weights / activations
_VMEM_LIMIT = 32 * 1024 * 1024       # safe on v5e/v6e/v7x


def _row_tile(n, max_tile=256):
    """Largest power-of-two row tile <= max_tile that divides n, else n (whole)."""
    t = max_tile
    while t >= 8:
        if n >= t and n % t == 0:
            return t
        t //= 2
    return n


def _cparams(n_axes):
    return pltpu.CompilerParams(
        dimension_semantics=("parallel",) * n_axes,
        vmem_limit_bytes=_VMEM_LIMIT,
    )


# --------------------------------------------------------------------------
# Kernel 1: patch-embedding matmul + CLS insert + pos-embed add + pre-LN
# --------------------------------------------------------------------------
def _embed_kernel(patches_ref, w_ref, cls_ref, pos_ref, g_ref, b_ref, o_ref, *, eps):
    # patches_ref: (1, S, K) with row 0 zero-padded (slot for the CLS token)
    x = patches_ref[0]                                                  # (S, K) bf16
    pe = jnp.dot(x, w_ref[...], preferred_element_type=jnp.float32)    # (S, H) f32
    s, h = pe.shape
    row = lax.broadcasted_iota(jnp.int32, (s, 1), 0)
    cls = cls_ref[...].astype(jnp.float32)                             # (1, H)
    emb = pe + jnp.where(row == 0, cls, 0.0)                           # CLS on row 0
    emb = emb + pos_ref[...].astype(jnp.float32)
    # pre-LayerNorm (f32 statistics)
    mean = jnp.mean(emb, axis=-1, keepdims=True)
    xc = emb - mean
    var = jnp.mean(xc * xc, axis=-1, keepdims=True)
    y = xc * lax.rsqrt(var + eps)
    y = y * g_ref[...].astype(jnp.float32) + b_ref[...].astype(jnp.float32)
    o_ref[0] = y.astype(o_ref.dtype)


def embed_prenorm(patches_padded, patch_w, cls_emb, pos_emb, g, b, eps):
    B, S, K = patches_padded.shape
    H = patch_w.shape[1]
    return pl.pallas_call(
        functools.partial(_embed_kernel, eps=eps),
        out_shape=jax.ShapeDtypeStruct((B, S, H), _ACT_DTYPE),
        grid=(B,),
        in_specs=[
            pl.BlockSpec((1, S, K), lambda i: (i, 0, 0)),
            pl.BlockSpec((K, H), lambda i: (0, 0)),
            pl.BlockSpec((1, H), lambda i: (0, 0)),
            pl.BlockSpec((S, H), lambda i: (0, 0)),
            pl.BlockSpec((1, H), lambda i: (0, 0)),
            pl.BlockSpec((1, H), lambda i: (0, 0)),
        ],
        out_specs=pl.BlockSpec((1, S, H), lambda i: (i, 0, 0)),
        compiler_params=_cparams(1),
    )(patches_padded, patch_w, cls_emb, pos_emb, g, b)


# --------------------------------------------------------------------------
# Kernel 2: LN1 + fused QKV projection (row-tiled)
# --------------------------------------------------------------------------
def _ln_qkv_kernel(x_ref, g_ref, b_ref, w_ref, bias_ref, q_ref, k_ref, v_ref, *, eps):
    x = x_ref[...].astype(jnp.float32)                                  # (tm, H)
    mean = jnp.mean(x, axis=-1, keepdims=True)
    xc = x - mean
    var = jnp.mean(xc * xc, axis=-1, keepdims=True)
    y = xc * lax.rsqrt(var + eps)
    y = y * g_ref[...].astype(jnp.float32) + b_ref[...].astype(jnp.float32)
    acc = jnp.dot(y.astype(w_ref.dtype), w_ref[...],
                  preferred_element_type=jnp.float32)                   # (tm, 3H)
    acc = acc + bias_ref[...].astype(jnp.float32)
    H = q_ref.shape[-1]
    q_ref[...] = acc[:, 0 * H:1 * H].astype(q_ref.dtype)
    k_ref[...] = acc[:, 1 * H:2 * H].astype(k_ref.dtype)
    v_ref[...] = acc[:, 2 * H:3 * H].astype(v_ref.dtype)


def ln_qkv(x, g, b, w_qkv, b_qkv, eps):
    N, H = x.shape
    H3 = w_qkv.shape[1]
    tm = _row_tile(N)
    shape = jax.ShapeDtypeStruct((N, H), _ACT_DTYPE)
    return pl.pallas_call(
        functools.partial(_ln_qkv_kernel, eps=eps),
        out_shape=(shape, shape, shape),
        grid=(N // tm,),
        in_specs=[
            pl.BlockSpec((tm, H), lambda i: (i, 0)),
            pl.BlockSpec((1, H), lambda i: (0, 0)),
            pl.BlockSpec((1, H), lambda i: (0, 0)),
            pl.BlockSpec((H, H3), lambda i: (0, 0)),
            pl.BlockSpec((1, H3), lambda i: (0, 0)),
        ],
        out_specs=(
            pl.BlockSpec((tm, H), lambda i: (i, 0)),
            pl.BlockSpec((tm, H), lambda i: (i, 0)),
            pl.BlockSpec((tm, H), lambda i: (i, 0)),
        ),
        compiler_params=_cparams(1),
    )(x, g, b, w_qkv, b_qkv)


# --------------------------------------------------------------------------
# Kernel 3: multi-head attention + output projection + residual (per batch)
# --------------------------------------------------------------------------
def _attn_kernel(q_ref, k_ref, v_ref, ow_ref, ob_ref, res_ref, o_ref, *,
                 num_heads, scale):
    q = q_ref[0]                                                        # (S, H) bf16
    k = k_ref[0]
    v = v_ref[0]
    H = q.shape[-1]
    hd = H // num_heads

    proj = None
    for h in range(num_heads):                                          # static unroll
        lo, hi = h * hd, (h + 1) * hd
        qh, kh, vh = q[:, lo:hi], k[:, lo:hi], v[:, lo:hi]
        # q @ k^T without materializing a transpose (contract last dims).
        s = lax.dot_general(qh, kh, (((1,), (1,)), ((), ())),
                            preferred_element_type=jnp.float32) * scale  # (S, S) f32
        m = jnp.max(s, axis=-1, keepdims=True)
        p = jnp.exp(s - m)
        p = p * pl.reciprocal(jnp.sum(p, axis=-1, keepdims=True), approx=True)
        out_h = jnp.dot(p.astype(vh.dtype), vh,
                        preferred_element_type=jnp.float32)              # (S, hd)
        # fused output projection: attn @ Wo == sum_h out_h @ Wo[h*hd:(h+1)*hd, :]
        contrib = jnp.dot(out_h.astype(ow_ref.dtype), ow_ref[lo:hi, :],
                          preferred_element_type=jnp.float32)            # (S, H)
        proj = contrib if proj is None else proj + contrib

    proj = proj + ob_ref[...].astype(jnp.float32) + res_ref[0].astype(jnp.float32)
    o_ref[0] = proj.astype(o_ref.dtype)


def attn_out_residual(q, k, v, o_w, o_b, residual, num_heads):
    B, S, H = q.shape
    scale = float((H // num_heads) ** -0.5)
    return pl.pallas_call(
        functools.partial(_attn_kernel, num_heads=num_heads, scale=scale),
        out_shape=jax.ShapeDtypeStruct((B, S, H), _ACT_DTYPE),
        grid=(B,),
        in_specs=[
            pl.BlockSpec((1, S, H), lambda i: (i, 0, 0)),
            pl.BlockSpec((1, S, H), lambda i: (i, 0, 0)),
            pl.BlockSpec((1, S, H), lambda i: (i, 0, 0)),
            pl.BlockSpec((H, H), lambda i: (0, 0)),
            pl.BlockSpec((1, H), lambda i: (0, 0)),
            pl.BlockSpec((1, S, H), lambda i: (i, 0, 0)),
        ],
        out_specs=pl.BlockSpec((1, S, H), lambda i: (i, 0, 0)),
        compiler_params=_cparams(1),
    )(q, k, v, o_w, o_b, residual)


# --------------------------------------------------------------------------
# Kernel 4: LN2 + fc1(quick_gelu) + fc2 + residual (row-tiled)
# --------------------------------------------------------------------------
def _ln_mlp_kernel(x_ref, g_ref, b_ref, w1_ref, b1_ref, w2_ref, b2_ref, o_ref, *, eps):
    x = x_ref[...].astype(jnp.float32)                                   # (tm, H)
    mean = jnp.mean(x, axis=-1, keepdims=True)
    xc = x - mean
    var = jnp.mean(xc * xc, axis=-1, keepdims=True)
    y = xc * lax.rsqrt(var + eps)
    y = y * g_ref[...].astype(jnp.float32) + b_ref[...].astype(jnp.float32)
    h = jnp.dot(y.astype(w1_ref.dtype), w1_ref[...],
                preferred_element_type=jnp.float32)                      # (tm, I)
    h = h + b1_ref[...].astype(jnp.float32)
    h = h * jax.nn.sigmoid(1.702 * h)                                    # quick_gelu
    out = jnp.dot(h.astype(w2_ref.dtype), w2_ref[...],
                  preferred_element_type=jnp.float32)                    # (tm, H)
    out = out + b2_ref[...].astype(jnp.float32) + x                      # + residual
    o_ref[...] = out.astype(o_ref.dtype)


def ln_mlp_residual(x, g, b, w1, b1, w2, b2, eps):
    N, H = x.shape
    I = w1.shape[1]
    tm = _row_tile(N)
    return pl.pallas_call(
        functools.partial(_ln_mlp_kernel, eps=eps),
        out_shape=jax.ShapeDtypeStruct((N, H), _ACT_DTYPE),
        grid=(N // tm,),
        in_specs=[
            pl.BlockSpec((tm, H), lambda i: (i, 0)),
            pl.BlockSpec((1, H), lambda i: (0, 0)),
            pl.BlockSpec((1, H), lambda i: (0, 0)),
            pl.BlockSpec((H, I), lambda i: (0, 0)),
            pl.BlockSpec((1, I), lambda i: (0, 0)),
            pl.BlockSpec((I, H), lambda i: (0, 0)),
            pl.BlockSpec((1, H), lambda i: (0, 0)),
        ],
        out_specs=pl.BlockSpec((tm, H), lambda i: (i, 0)),
        compiler_params=_cparams(1),
    )(x, g, b, w1, b1, w2, b2)


# --------------------------------------------------------------------------
# CLIP vision tower (forward-pass semantics of CLIPVisionTower)
# --------------------------------------------------------------------------
class CLIPVisionTowerPallas:
    """Pallas re-implementation of CLIPVisionTower.forward with synthetic weights."""

    def __init__(self, *, image_size=16, patch_size=8, num_channels=3,
                 hidden_size=32, intermediate_size=64, num_hidden_layers=2,
                 num_attention_heads=2, layer_norm_eps=1e-5,
                 freeze_vision=True, select_layer=0, select_feature="patch",
                 seed=0):
        self.image_size = image_size
        self.patch_size = patch_size
        self.num_channels = num_channels
        self.hidden_size = hidden_size
        self.intermediate_size = intermediate_size
        self.num_hidden_layers = num_hidden_layers
        self.num_heads = num_attention_heads
        self.head_dim = hidden_size // num_attention_heads
        self.eps = layer_norm_eps
        self.freeze_vision = freeze_vision
        self.select_layer = select_layer
        self.select_feature = select_feature

        grid = image_size // patch_size
        self.num_patches = grid * grid
        self.num_positions = self.num_patches + 1
        self.position_ids = jnp.arange(self.num_positions)

        # --- deterministic synthetic parameters (bf16 storage) ---
        key = jax.random.PRNGKey(seed)

        def nrm(k, shape):
            return (0.02 * jax.random.normal(k, shape)).astype(_ACT_DTYPE)

        H, I, C, P = hidden_size, intermediate_size, num_channels, patch_size
        keys = iter(jax.random.split(key, 4 + 4 * num_hidden_layers))

        self.class_embedding = nrm(next(keys), (1, H))
        self.patch_w = nrm(next(keys), (C * P * P, H))   # conv weight, (C,ph,pw) flat
        self.position_embedding = nrm(next(keys), (self.num_positions, H))
        _ = next(keys)
        self.pre_ln_g = jnp.ones((1, H), _ACT_DTYPE)
        self.pre_ln_b = jnp.zeros((1, H), _ACT_DTYPE)

        self.layers = []
        for _ in range(num_hidden_layers):
            layer = dict(
                ln1_g=jnp.ones((1, H), _ACT_DTYPE), ln1_b=jnp.zeros((1, H), _ACT_DTYPE),
                qkv_w=nrm(next(keys), (H, 3 * H)), qkv_b=jnp.zeros((1, 3 * H), _ACT_DTYPE),
                o_w=nrm(next(keys), (H, H)), o_b=jnp.zeros((1, H), _ACT_DTYPE),
                ln2_g=jnp.ones((1, H), _ACT_DTYPE), ln2_b=jnp.zeros((1, H), _ACT_DTYPE),
                fc1_w=nrm(next(keys), (H, I)), fc1_b=jnp.zeros((1, I), _ACT_DTYPE),
                fc2_w=nrm(next(keys), (I, H)), fc2_b=jnp.zeros((1, H), _ACT_DTYPE),
            )
            self.layers.append(layer)

    # ---- embeddings (mirrors forward_embeddings) + pre-LN, fused ----
    def _embeddings_prenorm(self, pixel_values):
        B, C, Hh, Ww = pixel_values.shape
        P = self.patch_size
        gh, gw = Hh // P, Ww // P
        x = pixel_values.astype(_ACT_DTYPE)
        # patch extraction (glue): NCHW -> (B, num_patches, C*P*P), row-major (gh, gw)
        x = x.reshape(B, C, gh, P, gw, P).transpose(0, 2, 4, 1, 3, 5)
        x = x.reshape(B, gh * gw, C * P * P)
        # zero row 0 = slot for the CLS token (added inside the kernel)
        x = jnp.concatenate([jnp.zeros((B, 1, C * P * P), _ACT_DTYPE), x], axis=1)
        # TODO(synk): resample_pos_embed uses bicubic+antialias F.interpolate which has
        # no clean Pallas equivalent; not needed here since num_positions == seq length.
        return embed_prenorm(x, self.patch_w, self.class_embedding,
                             self.position_embedding, self.pre_ln_g, self.pre_ln_b,
                             self.eps)

    # ---- one CLIP encoder layer (pre-LN, quick_gelu MLP) ----
    def _encoder_layer(self, x, p):
        B, S, H = x.shape
        x2 = x.reshape(B * S, H)
        q, k, v = ln_qkv(x2, p["ln1_g"], p["ln1_b"], p["qkv_w"], p["qkv_b"], self.eps)
        x = attn_out_residual(q.reshape(B, S, H), k.reshape(B, S, H),
                              v.reshape(B, S, H), p["o_w"], p["o_b"], x,
                              self.num_heads)
        y = ln_mlp_residual(x.reshape(B * S, H), p["ln2_g"], p["ln2_b"],
                            p["fc1_w"], p["fc1_b"], p["fc2_w"], p["fc2_b"], self.eps)
        return y.reshape(B, S, H)

    # ---- CLIPVisionModel(..., output_hidden_states=True) ----
    def _vision_tower(self, pixel_values):
        x = self._embeddings_prenorm(pixel_values)       # (B, S, H) = encoder input
        hidden_states = [x]                              # hidden_states[0]
        for p in self.layers:
            x = self._encoder_layer(x, p)
            hidden_states.append(x)
        return hidden_states

    # ---- feature_select ----
    def feature_select(self, hidden_states):
        if self.select_layer > 100:
            n_layer = len(hidden_states) - 1
            mod_index = max(n_layer // (self.select_layer // 100), 1)
            feats = [hidden_states[i + 1] for i in range(n_layer)
                     if (i + 1) % mod_index == 0]
            image_features = jnp.concatenate(feats, axis=-1)
        else:
            image_features = hidden_states[self.select_layer]
        if self.select_feature == "patch":
            image_features = image_features[:, 1:]
        elif self.select_feature == "cls_patch":
            pass
        else:
            raise ValueError(f"Unexpected select feature: {self.select_feature}")
        return image_features

    def _forward_images(self, images):
        if isinstance(images, list):
            # stack and run one batched forward instead of per-image chains
            batch = jnp.stack([jnp.asarray(im) for im in images], axis=0)
            hs = self._vision_tower(batch)
            feats = self.feature_select(hs)
            return [feats[i:i + 1].astype(jnp.asarray(images[i]).dtype)
                    for i in range(len(images))]
        hs = self._vision_tower(images)
        return self.feature_select(hs).astype(images.dtype)

    def forward(self, images):
        feats = self._forward_images(images)
        if self.freeze_vision:                            # torch.no_grad() analogue
            feats = jax.tree_util.tree_map(jax.lax.stop_gradient, feats)
        return feats

    __call__ = forward


# ---------------------------------- main -----------------------------------
if __name__ == "__main__":
    key = jax.random.PRNGKey(0)
    # Small synthetic config: 16x16 image, 8x8 patches -> 4 patches (+1 CLS), hidden=32.
    images = jax.random.normal(key, (2, 3, 16, 16), jnp.float32)

    tower = CLIPVisionTowerPallas(
        image_size=16, patch_size=8, num_channels=3,
        hidden_size=32, intermediate_size=64,
        num_hidden_layers=2, num_attention_heads=2,
        freeze_vision=True, select_layer=-2, select_feature="patch",
    )

    feats = tower(images)
    feats = jax.block_until_ready(feats)

    expected = (2, tower.num_patches, tower.hidden_size)   # (2, 4, 32) — CLS dropped
    assert feats.shape == expected, (feats.shape, expected)
    assert feats.dtype == images.dtype
    assert bool(jnp.all(jnp.isfinite(feats)))
    print("KERNEL_OK")
</pallas_src>

<mosaic_0001>
module attributes {stable_mosaic.version = 11 : i64} {
  func.func @_embed_kernel(%arg0: i32, %arg1: memref<1x5x192xbf16, #tpu.memory_space<vmem>>, %arg2: memref<192x32xbf16, #tpu.memory_space<vmem>>, %arg3: memref<1x32xbf16, #tpu.memory_space<vmem>>, %arg4: memref<5x32xbf16, #tpu.memory_space<vmem>>, %arg5: memref<1x32xbf16, #tpu.memory_space<vmem>>, %arg6: memref<1x32xbf16, #tpu.memory_space<vmem>>, %arg7: memref<1x5x32xbf16, #tpu.memory_space<vmem>>) attributes {dimension_semantics = [#tpu.dimension_semantics<parallel>], iteration_bounds = array<i64: 2>, scalar_prefetch = 0 : i64, scratch_operands = 0 : i64, tpu.core_type = #tpu.core_type<tc>, window_params = [{transform_indices = @transform_0, window_bounds = array<i64: 1, 5, 192>}, {pipeline_mode = #tpu.pipeline_mode<synchronous>, transform_indices = @transform_1, window_bounds = array<i64: 192, 32>}, {pipeline_mode = #tpu.pipeline_mode<synchronous>, transform_indices = @transform_2, window_bounds = array<i64: 1, 32>}, {pipeline_mode = #tpu.pipeline_mode<synchronous>, transform_indices = @transform_3, window_bounds = array<i64: 5, 32>}, {pipeline_mode = #tpu.pipeline_mode<synchronous>, transform_indices = @transform_4, window_bounds = array<i64: 1, 32>}, {pipeline_mode = #tpu.pipeline_mode<synchronous>, transform_indices = @transform_5, window_bounds = array<i64: 1, 32>}, {transform_indices = @transform_6, window_bounds = array<i64: 1, 5, 32>}]} {
    %c0 = arith.constant 0 : index
    %c0_0 = arith.constant 0 : index
    %c0_1 = arith.constant 0 : index
    %0 = vector.load %arg1[%c0, %c0_0, %c0_1] : memref<1x5x192xbf16, #tpu.memory_space<vmem>>, vector<1x5x192xbf16>
    %1 = vector.shape_cast %0 : vector<1x5x192xbf16> to vector<5x192xbf16>
    %c0_2 = arith.constant 0 : index
    %c0_3 = arith.constant 0 : index
    %2 = vector.load %arg2[%c0_2, %c0_3] : memref<192x32xbf16, #tpu.memory_space<vmem>>, vector<192x32xbf16>
    %cst = arith.constant dense<0.000000e+00> : vector<5x32xf32>
    %3 = tpu.matmul %1, %2, %cst {dimension_numbers = #tpu.dot_dimension_numbers<[1], [0], [0], [1], [0, 0, 1, 1], [], []>} : vector<5x192xbf16>, vector<192x32xbf16>, vector<5x32xf32> -> vector<5x32xf32>
    %4 = tpu.iota {dimensions = array<i32: 0>} : vector<5x1xi32>
    %c0_4 = arith.constant 0 : index
    %c0_5 = arith.constant 0 : index
    %5 = vector.load %arg3[%c0_4, %c0_5] : memref<1x32xbf16, #tpu.memory_space<vmem>>, vector<1x32xbf16>
    %6 = arith.extf %5 : vector<1x32xbf16> to vector<1x32xf32>
    %c0_i32 = arith.constant 0 : i32
    %7 = vector.broadcast %c0_i32 : i32 to vector<5x1xi32>
    %8 = arith.cmpi eq, %4, %7 : vector<5x1xi32>
    %cst_6 = arith.constant 0.000000e+00 : f32
    %9 = vector.shape_cast %8 : vector<5x1xi1> to vector<5x1xi1>
    %10 = vector.broadcast %9 : vector<5x1xi1> to vector<5x32xi1>
    %11 = vector.shape_cast %6 : vector<1x32xf32> to vector<1x32xf32>
    %12 = vector.broadcast %11 : vector<1x32xf32> to vector<5x32xf32>
    %13 = vector.broadcast %cst_6 : f32 to vector<5x32xf32>
    %14 = arith.select %10, %12, %13 : vector<5x32xi1>, vector<5x32xf32>
    %15 = arith.addf %3, %14 : vector<5x32xf32>
    %c0_7 = arith.constant 0 : index
    %c0_8 = arith.constant 0 : index
    %16 = vector.load %arg4[%c0_7, %c0_8] : memref<5x32xbf16, #tpu.memory_space<vmem>>, vector<5x32xbf16>
    %17 = arith.extf %16 : vector<5x32xbf16> to vector<5x32xf32>
    %18 = arith.addf %15, %17 : vector<5x32xf32>
    %cst_9 = arith.constant dense<0.000000e+00> : vector<5xf32>
    %19 = vector.multi_reduction <add>, %18, %cst_9 [1] : vector<5x32xf32> to vector<5xf32>
    %20 = vector.shape_cast %19 : vector<5xf32> to vector<5x1xf32>
    %cst_10 = arith.constant 3.200000e+01 : f32
    %21 = vector.broadcast %cst_10 : f32 to vector<5x1xf32>
    %22 = arith.divf %20, %21 : vector<5x1xf32>
    %23 = vector.broadcast %22 : vector<5x1xf32> to vector<5x32xf32>
    %24 = arith.subf %18, %23 : vector<5x32xf32>
    %25 = arith.mulf %24, %24 : vector<5x32xf32>
    %cst_11 = arith.constant dense<0.000000e+00> : vector<5xf32>
    %26 = vector.multi_reduction <add>, %25, %cst_11 [1] : vector<5x32xf32> to vector<5xf32>
    %27 = vector.shape_cast %26 : vector<5xf32> to vector<5x1xf32>
    %cst_12 = arith.constant 3.200000e+01 : f32
    %28 = vector.broadcast %cst_12 : f32 to vector<5x1xf32>
    %29 = arith.divf %27, %28 : vector<5x1xf32>
    %cst_13 = arith.constant 9.99999974E-6 : f32
    %30 = vector.broadcast %cst_13 : f32 to vector<5x1xf32>
    %31 = arith.addf %29, %30 : vector<5x1xf32>
    %32 = math.rsqrt %31 : vector<5x1xf32>
    %33 = vector.broadcast %32 : vector<5x1xf32> to vector<5x32xf32>
    %34 = arith.mulf %24, %33 : vector<5x32xf32>
    %c0_14 = arith.constant 0 : index
    %c0_15 = arith.constant 0 : index
    %35 = vector.load %arg5[%c0_14, %c0_15] : memref<1x32xbf16, #tpu.memory_space<vmem>>, vector<1x32xbf16>
    %36 = arith.extf %35 : vector<1x32xbf16> to vector<1x32xf32>
    %37 = vector.broadcast %36 : vector<1x32xf32> to vector<5x32xf32>
    %38 = arith.mulf %34, %37 : vector<5x32xf32>
    %c0_16 = arith.constant 0 : index
    %c0_17 = arith.constant 0 : index
    %39 = vector.load %arg6[%c0_16, %c0_17] : memref<1x32xbf16, #tpu.memory_space<vmem>>, vector<1x32xbf16>
    %40 = arith.extf %39 : vector<1x32xbf16> to vector<1x32xf32>
    %41 = vector.broadcast %40 : vector<1x32xf32> to vector<5x32xf32>
    %42 = arith.addf %38, %41 : vector<5x32xf32>
    %43 = arith.truncf %42 : vector<5x32xf32> to vector<5x32xbf16>
    %c0_18 = arith.constant 0 : index
    %c0_19 = arith.constant 0 : index
    %c0_20 = arith.constant 0 : index
    %44 = vector.load %arg7[%c0_18, %c0_19, %c0_20] : memref<1x5x32xbf16, #tpu.memory_space<vmem>>, vector<1x5x32xbf16>
    %45 = vector.shape_cast %44 : vector<1x5x32xbf16> to vector<5x32xbf16>
    %46 = vector.shape_cast %43 : vector<5x32xbf16> to vector<1x5x32xbf16>
    tpu.vector_store %arg7[%c0_18, %c0_19, %c0_20], %46 {strides = array<i32>} : memref<1x5x32xbf16, #tpu.memory_space<vmem>>, vector<1x5x32xbf16>,
    return
  }
  func.func @transform_0(%arg0: i32) -> (i32, i32, i32) {
    %c0_i32 = arith.constant 0 : i32
    %c0_i32_0 = arith.constant 0 : i32
    %c0_i32_1 = arith.constant 0 : i32
    return %arg0, %c0_i32, %c0_i32_0 : i32, i32, i32
  }
  func.func @transform_1(%arg0: i32) -> (i32, i32) {
    %c0_i32 = arith.constant 0 : i32
    %c0_i32_0 = arith.constant 0 : i32
    %c0_i32_1 = arith.constant 0 : i32
    return %c0_i32, %c0_i32_0 : i32, i32
  }
  func.func @transform_2(%arg0: i32) -> (i32, i32) {
    %c0_i32 = arith.constant 0 : i32
    %c0_i32_0 = arith.constant 0 : i32
    %c0_i32_1 = arith.constant 0 : i32
    return %c0_i32, %c0_i32_0 : i32, i32
  }
  func.func @transform_3(%arg0: i32) -> (i32, i32) {
    %c0_i32 = arith.constant 0 : i32
    %c0_i32_0 = arith.constant 0 : i32
    %c0_i32_1 = arith.constant 0 : i32
    return %c0_i32, %c0_i32_0 : i32, i32
  }
  func.func @transform_4(%arg0: i32) -> (i32, i32) {
    %c0_i32 = arith.constant 0 : i32
    %c0_i32_0 = arith.constant 0 : i32
    %c0_i32_1 = arith.constant 0 : i32
    return %c0_i32, %c0_i32_0 : i32, i32
  }
  func.func @transform_5(%arg0: i32) -> (i32, i32) {
    %c0_i32 = arith.constant 0 : i32
    %c0_i32_0 = arith.constant 0 : i32
    %c0_i32_1 = arith.constant 0 : i32
    return %c0_i32, %c0_i32_0 : i32, i32
  }
  func.func @transform_6(%arg0: i32) -> (i32, i32, i32) {
    %c0_i32 = arith.constant 0 : i32
    %c0_i32_0 = arith.constant 0 : i32
    %c0_i32_1 = arith.constant 0 : i32
    return %arg0, %c0_i32, %c0_i32_0 : i32, i32, i32
  }
}

</mosaic_0001>

<bundles_post_ra>
// kernel: tpu_custom_call.1
= control target key start
LH: loop header
LB: loop body
LE: loop exit
PB: predicated region body
PF: predicated region fallthrough
CT: control target
= control target key end

     0   :  { %s597_s21 = smov 0   ;;  %s666_s0 = inlined_call_operand.vmem [shape: bf16[2,5,192], index: 0, kind: input, shape index: {}]   ;;  %s667_s1 = inlined_call_operand.vmem [shape: bf16[192,32], index: 1, kind: input, shape index: {}]   ;;  %s668_s2 = inlined_call_operand.vmem [shape: bf16[1,32], index: 2, kind: input, shape index: {}]   ;;  %s669_s3 = inlined_call_operand.vmem [shape: bf16[5,32], index: 3, kind: input, shape index: {}]   ;;  %s670_s4 = inlined_call_operand.vmem [shape: bf16[1,32], index: 4, kind: input, shape index: {}]   ;;  %s671_s5 = inlined_call_operand.vmem [shape: bf16[1,32], index: 5, kind: input, shape index: {}]   ;;  %s672_s6 = inlined_call_operand.vmem [shape: bf16[2,5,32], index: 6, kind: output, shape index: {}]  }
   0x1 LB: > { %s502_s22 = sadd.s32 4294967295, %s559_s21   ;;  %p506_p0 = scmp.ge.s32.totalorder %s559_s21, 1  ;;  %s559_s21 = sphi %s597_s21, %s16_s21  }
   0x2   : > { %p212_p1 = scmp.lt.s32.totalorder %s559_s21, 3 }
   0x4   : > { %p213_p2 = pnand %p506_p0, %p212_p1 }
   0x5   : > { %v537_v0 = vld [vmem:[%s667_s1] sm:$0xff] (!%p213_p2)   ;;  %v561_v1 = vmov (!%p213_p2), 0   ;;  %p241_p3 = scmp.lt.s32.totalorder (!%p213_p2), %s502_s22, 1  ;;  %v538_v2 = vld [vmem:[%s667_s1 + $0x8] sm:$0xff] (!%p213_p2)   ;;  %v539_v3 = vld [vmem:[%s667_s1 + $0x10] sm:$0xff] (!%p213_p2)   ;;  %vm366_vm0 = vcmask (!%p213_p2), 523264   ;;  %v276_v16 = vlaneseq (!%p213_p2) }
   0x6   : > { %216 = sbr.rel (%p213_p2) target bundleno = 587 (0x24b), region = 44  ;;  %370 = vmatprep.subr.bf16.mxu0 (!%p213_p2), %v561_v1  ;;  %v540_v4 = vld [vmem:[%s667_s1 + $0x18] sm:$0xff] (!%p213_p2)   ;;  %v541_v7 = vld [vmem:[%s667_s1 + $0x20] sm:$0xff] (!%p213_p2)   ;;  %v542_v8 = vld [vmem:[%s667_s1 + $0x28] sm:$0xff] (!%p213_p2)   ;;  %vm413_vm2 = vcmask (!%p213_p2), 258048   ;;  %vm443_vm3 = vcmask (!%p213_p2), 256000  }
   0x7   : > { %371 = vmatpush1.bf16.msra.mxu0 (!%p213_p2), %v537_v0  ;;  %v543_v9 = vld [vmem:[%s667_s1 + $0x30] sm:$0xff] (!%p213_p2)   ;;  %v544_v10 = vld [vmem:[%s667_s1 + $0x38] sm:$0xff] (!%p213_p2)   ;;  %v545_v11 = vld [vmem:[%s667_s1 + $0x40] sm:$0xff] (!%p213_p2)   ;;  %v277_v17 = vshrl.u32 (!%p213_p2), %v276_v16, 7  ;;  %vm444_vm4 = vsmask.f32 (!%p213_p2), 2304 }
   0x8   : > { %372 = vmatprep.subr.bf16.mxu0 (!%p213_p2), %v561_v1  ;;  %v546_v12 = vld [vmem:[%s667_s1 + $0x48] sm:$0xff] (!%p213_p2)   ;;  %v547_v13 = vld [vmem:[%s667_s1 + $0x50] sm:$0xff] (!%p213_p2)   ;;  %v548_v14 = vld [vmem:[%s667_s1 + $0x58] sm:$0xff] (!%p213_p2)  }
   0x9   : > { %v278_v18 = vld [vmem:[%s668_s2] sm:$0x1] (!%p213_p2)  ;;  %v285_v20 = vsub.s32 (!%p213_p2), 0, %v277_v17  ;;  %vm280_vm1 = vcmp.eq.s32.totalorder (!%p213_p2), %v277_v17, 0  ;;  %vm445_vm5 = vmand (!%p213_p2), %vm443_vm3, %vm444_vm4 }
   0xa   : > { %v279_v19 = vunpack.c.l.bf16 (!%p213_p2), %v278_v18  ;;  %v410_v22 = vld [vmem:[%s669_s3] sm:$0x7] (!%p213_p2) }
   0xb   : > { %373 = vmatpush1.bf16.msra.mxu0 (!%p213_p2), %v538_v2  ;;  %v411_v24 = vunpack.c.l.bf16 (!%p213_p2), %v410_v22  ;;  %v428_v40 = vld [vmem:[%s670_s4] sm:$0x1] (!%p213_p2) }
   0xc   : > { %374 = vmatprep.subr.bf16.mxu0 (!%p213_p2), %v561_v1  ;;  %v286_v21 = vrot.slane (!%p213_p2), %v279_v19, %v285_v20  ;;  %v435_v41 = vld [vmem:[%s671_s5] sm:$0x1] (!%p213_p2)  ;;  %v429_v42 = vunpack.c.l.bf16 (!%p213_p2), %v428_v40 }
   0xd   : > { %s674_s22 = smov (!%p241_p3, %s502_s22), 1  ;;  %v436_v43 = vunpack.c.l.bf16 %v435_v41 }
   0xe   : > { %s527_s29 = sshll.u32 %s674_s22, 3  ;;  %v287_v23 = vsel %vm280_vm1, %v286_v21, 0.0  ;;  %v433_v44 = vrot.slane %v429_v42, %v285_v20  ;;  %s509_s13 = sshll.u32 %s674_s22, 2 }
   0xf   : > { %s245_s8 = scalar_lea.vmem %s666_s0, %s527_s29  ;;  %375 = vmatpush1.bf16.msra.mxu0 %v539_v3  ;;  %v440_v46 = vrot.slane %v436_v43, %v285_v20  ;;  %s249_s16 = scalar_lea.vmem %s672_s6, %s509_s13 }
  0x10   : > { %376 = vmatprep.subr.bf16.mxu0 %v561_v1  ;;  %v251_v5 = vld [vmem:[%s245_s8] sm:$0x77] }
  0x11   : > { %v511_v6 = vcombine.high %v251_v5, %v251_v5  ;;  %v510_v15 = vcombine.low %v251_v5, %v251_v5  ;;  %v446_v50 = vld [vmem:[%s249_s16] sm:$0x7] }
  0x13   : > { %377 = vmatpush1.bf16.msra.mxu0 %v540_v4  ;;  %524 = vmatprep.mubr.msk.bf16.mxu0 %vm366_vm0, %v511_v6 }
  0x14   : > { %378 = vmatprep.subr.bf16.mxu0 %v561_v1 }
  0x17   : > { %379 = vmatpush1.bf16.msra.mxu0 %v541_v7 }
  0x18   : > { %380 = vmatprep.subr.bf16.mxu0 %v561_v1 }
  0x1b   : > { %381 = vmatpush1.bf16.msra.mxu0 %v542_v8 }
  0x1c   : > { %382 = vmatprep.subr.bf16.mxu0 %v561_v1 }
  0x1f   : > { %383 = vmatpush1.bf16.msra.mxu0 %v543_v9 }
  0x20   : > { %384 = vmatprep.subr.bf16.mxu0 %v561_v1 }
  0x23   : > { %385 = vmatpush1.bf16.msra.mxu0 %v544_v10 }
  0x24   : > { %386 = vmatprep.subr.bf16.mxu0 %v561_v1 }
  0x27   : > { %387 = vmatpush1.bf16.msra.mxu0 %v545_v11 }
  0x28   : > { %388 = vmatprep.subr.bf16.mxu0 %v561_v1 }
  0x2b   : > { %389 = vmatpush1.bf16.msra.mxu0 %v546_v12 }
  0x2c   : > { %390 = vmatprep.subr.bf16.mxu0 %v561_v1 }
  0x2f   : > { %391 = vmatpush1.bf16.msra.mxu0 %v547_v13 }
  0x30   : > { %392 = vmatprep.subr.bf16.mxu0 %v561_v1 }
  0x33   : > { %393 = vmatpush1.bf16.msra.mxu0 %v548_v14 }
  0x36   : > { %403 = vmatmul.mubr.bf16.vlgmr.msra.gmra.mrb[0].mxu0 %v510_v15 }
 0x109   : > { %v404_v25 = vpop.f32.mrb[0].mxu0 }
 0x10a   : > { %v405_v26 = vadd.f32 %v404_v25, %v287_v23  ;;  %v406_v27 = vpop.f32.mrb[1].mxu0 }
 0x10b   : > { %v407_v28 = vpop.f32.mrb[2].mxu0 }
 0x10c   : > { %v408_v29 = vpop.f32.mrb[3].mxu0  ;;  %v412_v30 = vadd.f32 %v411_v24, %v405_v26 }
 0x10e   : > { %v414_v31 = vsel %vm413_vm2, %v412_v30, 0.0 }
 0x10f   : > { %415 = vadd.xlane.f32.xlu0 %v414_v31 }
 0x19c   : > { %v416_v32 = vpop.xlane.xlu0 %415 }
 0x19d   : > { %v418_v33 = vmul.f32 0.03125, %v416_v32 }
 0x19f   : > { %v419_v34 = vsub.f32 %v412_v30, %v418_v33 }
 0x1a1   : > { %v420_v35 = vmul.f32 %v419_v34, %v419_v34 }
 0x1a3   : > { %v421_v36 = vsel %vm413_vm2, %v420_v35, 0.0 }
 0x1a4   : > { %422 = vadd.xlane.f32.xlu0 %v421_v36 }
 0x231   : > { %v423_v37 = vpop.xlane.xlu0 %422 }
 0x232   : > { %v424_v38 = vmul.f32 0.03125, %v423_v37 }
 0x234   : > { %v425_v39 = vadd.f32 1e-05, %v424_v38 }
 0x236   : > { %551 = vrsqrt.f32 %v425_v39 }
 0x240   : > { %v552_v45 = vpop.eup %551 }
 0x241   : > { %v427_v47 = vmul.f32 %v552_v45, %v419_v34 }
 0x243   : > { %v434_v48 = vmul.f32 %v433_v44, %v427_v47 }
 0x245   : > { %v441_v49 = vadd.f32 %v440_v46, %v434_v48 }
 0x247   : > { %v442_v51 = vpack.c.bf16 %v441_v49, %v441_v49 }
 0x249   : > { %v447_v52 = vsel %vm445_vm5, %v442_v51, %v446_v50 }
 0x24a   : > { %448 = vst [vmem:[%s249_s16] sm:$0x7] %v447_v52 }
 0x24b PF: > { %s16_s21 = sadd.s32 1, %s559_s21  }
 0x24c   : > { %p13_p4 = scmp.ge.s32.totalorder %s16_s21, 4  }
 0x24e   :  { %15 = sbr.rel (!%p13_p4) target bundleno = 1 (0x1), region = 74 }

</bundles_post_ra>
